<compile_context>
chip_gen: v7x
topology: tpu7x:2x2x1
jax: 0.10.0
libtpu: 0.0.40
codegen_flags: <defaults>
</compile_context>

<pallas_src>
import math
from functools import partial

import jax
import jax.numpy as jnp
from jax.experimental import pallas as pl
from jax.experimental.pallas import tpu as pltpu


def _decoder_kernel(x_ref, wt_ref, b_ref, out_ref, acc_ref, *, hw_total):
    # x_ref : (TN, THW, C)   activations tile (native dtype, e.g. bf16/f32)
    # wt_ref: (C, Kp)        f32, PyTorch weight.T with 1/HW folded in, K padded
    # b_ref : (1, Kp)        f32, padded bias
    # out_ref:(TN, Kp)       output tile (resident across the reduction axis)
    # acc_ref:(TN, C)        f32 VMEM accumulator for the pooled sum
    kv = pl.program_id(1)

    @pl.when(kv == 0)
    def _init():
        acc_ref[...] = jnp.zeros_like(acc_ref)

    x = x_ref[...].astype(jnp.float32)            # upcast at load; f32 accumulation
    thw = x_ref.shape[1]
    if hw_total % thw != 0:
        # Last HW tile runs past the end of the array; zero the padded rows so
        # they do not pollute the pooled sum.
        remaining = hw_total - kv * thw
        idx = jax.lax.broadcasted_iota(jnp.int32, (thw, x_ref.shape[2]), 0)
        x = jnp.where((idx < remaining)[None, :, :], x, 0.0)

    acc_ref[...] += jnp.sum(x, axis=1)            # partial spatial sum -> (TN, C)

    @pl.when(kv == pl.num_programs(1) - 1)
    def _finalize():
        pooled = acc_ref[...]                     # mean scale already in wt_ref
        y = jnp.dot(pooled, wt_ref[...], preferred_element_type=jnp.float32)
        out_ref[...] = (y + b_ref[...]).astype(out_ref.dtype)


def resnet_decoder(x_nchw, weight, bias, *, hw_tile=512, n_tile=None):
    """Global average pool over (H, W) followed by Linear(in_features, n_classes).

    x_nchw: (N, C, H, W)  activations (f32 or bf16 — kept in native dtype)
    weight: (K, C)        PyTorch-style Linear weight
    bias:   (K,)
    returns (N, K) in x's dtype.
    """
    N, C, H, W = x_nchw.shape
    K = weight.shape[0]
    HW = H * W

    # Channels-last layout so C sits on the lane dim inside the kernel.
    # TODO(synk): if the upstream producer is already NHWC, consume it directly
    # and skip this transpose (it is pure layout plumbing).
    x_nhwc = jnp.transpose(x_nchw, (0, 2, 3, 1)).reshape(N, HW, C)

    # Pad K up to a lane-dense multiple of 128; fold the 1/HW mean scale into W.
    Kp = max(128, ((K + 127) // 128) * 128)
    inv_hw = 1.0 / float(HW)
    w_t = weight.T.astype(jnp.float32) * inv_hw               # (C, K)
    w_t = jnp.pad(w_t, ((0, 0), (0, Kp - K)))                 # (C, Kp)
    b2 = jnp.pad(bias.astype(jnp.float32), (0, Kp - K)).reshape(1, Kp)

    # --- tile sizes -----------------------------------------------------------
    thw = min(hw_tile, HW)
    if thw < HW and thw % 8 != 0:                 # (8,128) sublane constraint
        thw = min(HW, -(-thw // 8) * 8)
    tn = N if n_tile is None else min(n_tile, N)
    if tn < N and tn % 8 != 0:
        tn = min(N, -(-tn // 8) * 8)

    nb = pl.cdiv(N, tn)          # batch tiles  -> "parallel" (v7x megacore)
    nk = pl.cdiv(HW, thw)        # HW reduction -> "arbitrary"

    # --- VMEM budget: double-buffered blocks + scratch + headroom ------------
    x_block_bytes = tn * thw * C * x_nhwc.dtype.itemsize
    static_bytes = (C * Kp + Kp + tn * Kp) * 4
    vmem_limit = 2 * (x_block_bytes + static_bytes) + tn * C * 4 + (4 << 20)
    vmem_limit = int(min(max(vmem_limit, 16 << 20), 64 << 20))

    kernel = partial(_decoder_kernel, hw_total=HW)

    out_padded = pl.pallas_call(
        kernel,
        out_shape=jax.ShapeDtypeStruct((N, Kp), x_nchw.dtype),
        grid_spec=pltpu.PrefetchScalarGridSpec(
            num_scalar_prefetch=0,
            grid=(nb, nk),
            in_specs=[
                pl.BlockSpec((tn, thw, C), lambda i, k: (i, k, 0)),   # x tile
                pl.BlockSpec((C, Kp), lambda i, k: (0, 0)),           # W^T (resident)
                pl.BlockSpec((1, Kp), lambda i, k: (0, 0)),           # bias
            ],
            out_specs=pl.BlockSpec((tn, Kp), lambda i, k: (i, 0)),    # resident across k
            scratch_shapes=[pltpu.VMEM((tn, C), jnp.float32)],        # pooled-sum acc
        ),
        compiler_params=pltpu.CompilerParams(
            dimension_semantics=("parallel", "arbitrary"),
            vmem_limit_bytes=vmem_limit,
        ),
    )(x_nhwc, w_t, b2)

    return out_padded[:, :K]


if __name__ == "__main__":
    key = jax.random.PRNGKey(0)
    k_x, k_w, k_b = jax.random.split(key, 3)

    # Shapes implied by the module: NCHW input, in_features = C, n_classes = K.
    N, C, H, W = 2, 4, 16, 16
    K = 8

    x = jax.random.normal(k_x, (N, C, H, W), dtype=jnp.float32)

    # Deterministic PyTorch-Linear-style init: U(-1/sqrt(C), 1/sqrt(C)).
    bound = 1.0 / math.sqrt(C)
    weight = jax.random.uniform(k_w, (K, C), minval=-bound, maxval=bound,
                                dtype=jnp.float32)
    bias = jax.random.uniform(k_b, (K,), minval=-bound, maxval=bound,
                              dtype=jnp.float32)

    # Pure-JAX reference.
    ref = jnp.mean(x, axis=(2, 3)) @ weight.T + bias

    # 1) f32, multi-step HW reduction (HW=256, tile=128 -> 2 grid steps).
    out = resnet_decoder(x, weight, bias, hw_tile=128)
    jax.block_until_ready(out)
    assert out.shape == (N, K)
    assert jnp.allclose(out, ref, atol=1e-5, rtol=1e-5)

    # 2) non-dividing HW tile (96 -> 3 steps, last one masked).
    out_mask = resnet_decoder(x, weight, bias, hw_tile=96)
    jax.block_until_ready(out_mask)
    assert jnp.allclose(out_mask, ref, atol=1e-5, rtol=1e-5)

    # 3) bf16 activations DMA'd as bf16, f32 accumulation in-kernel.
    out_bf16 = resnet_decoder(x.astype(jnp.bfloat16), weight, bias, hw_tile=128)
    jax.block_until_ready(out_bf16)
    assert jnp.allclose(out_bf16.astype(jnp.float32), ref, atol=3e-2, rtol=3e-2)

    print("KERNEL_OK")
</pallas_src>

<mosaic_0001>
module attributes {stable_mosaic.version = 11 : i64} {
  func.func @_decoder_kernel(%arg0: i32, %arg1: i32, %arg2: memref<2x128x4xf32, #tpu.memory_space<vmem>>, %arg3: memref<4x128xf32, #tpu.memory_space<vmem>>, %arg4: memref<1x128xf32, #tpu.memory_space<vmem>>, %arg5: memref<2x128xf32, #tpu.memory_space<vmem>>, %arg6: memref<2x4xf32, #tpu.memory_space<vmem>>) attributes {dimension_semantics = [#tpu.dimension_semantics<parallel>, #tpu.dimension_semantics<arbitrary>], iteration_bounds = array<i64: 1, 2>, scalar_prefetch = 0 : i64, scratch_operands = 1 : i64, tpu.core_type = #tpu.core_type<tc>, window_params = [{transform_indices = @transform_0, window_bounds = array<i64: 2, 128, 4>}, {pipeline_mode = #tpu.pipeline_mode<synchronous>, transform_indices = @transform_1, window_bounds = array<i64: 4, 128>}, {pipeline_mode = #tpu.pipeline_mode<synchronous>, transform_indices = @transform_2, window_bounds = array<i64: 1, 128>}, {transform_indices = @transform_3, window_bounds = array<i64: 2, 128>}]} {
    %c0_i32 = arith.constant 0 : i32
    %0 = arith.cmpi eq, %arg1, %c0_i32 : i32
    %1 = arith.extui %0 : i1 to i32
    %c0_i32_0 = arith.constant 0 : i32
    %2 = arith.cmpi ne, %1, %c0_i32_0 : i32
    scf.if %2 {
      %cst_8 = arith.constant 0.000000e+00 : f32
      %11 = vector.broadcast %cst_8 : f32 to vector<2x4xf32>
      %c0_9 = arith.constant 0 : index
      %c0_10 = arith.constant 0 : index
      %12 = vector.load %arg6[%c0_9, %c0_10] : memref<2x4xf32, #tpu.memory_space<vmem>>, vector<2x4xf32>
      tpu.vector_store %arg6[%c0_9, %c0_10], %11 {strides = array<i32>} : memref<2x4xf32, #tpu.memory_space<vmem>>, vector<2x4xf32>,
    } else {
    }
    %c0 = arith.constant 0 : index
    %c0_1 = arith.constant 0 : index
    %c0_2 = arith.constant 0 : index
    %3 = vector.load %arg2[%c0, %c0_1, %c0_2] : memref<2x128x4xf32, #tpu.memory_space<vmem>>, vector<2x128x4xf32>
    %c0_3 = arith.constant 0 : index
    %c0_4 = arith.constant 0 : index
    %4 = vector.load %arg6[%c0_3, %c0_4] : memref<2x4xf32, #tpu.memory_space<vmem>>, vector<2x4xf32>
    %cst = arith.constant dense<0.000000e+00> : vector<2x4xf32>
    %5 = vector.multi_reduction <add>, %3, %cst [1] : vector<2x128x4xf32> to vector<2x4xf32>
    %6 = arith.addf %4, %5 : vector<2x4xf32>
    %c0_5 = arith.constant 0 : index
    %c0_6 = arith.constant 0 : index
    %7 = vector.load %arg6[%c0_5, %c0_6] : memref<2x4xf32, #tpu.memory_space<vmem>>, vector<2x4xf32>
    tpu.vector_store %arg6[%c0_5, %c0_6], %6 {strides = array<i32>} : memref<2x4xf32, #tpu.memory_space<vmem>>, vector<2x4xf32>,
    %c1_i32 = arith.constant 1 : i32
    %8 = arith.cmpi eq, %arg1, %c1_i32 : i32
    %9 = arith.extui %8 : i1 to i32
    %c0_i32_7 = arith.constant 0 : i32
    %10 = arith.cmpi ne, %9, %c0_i32_7 : i32
    scf.if %10 {
      %c0_8 = arith.constant 0 : index
      %c0_9 = arith.constant 0 : index
      %11 = vector.load %arg6[%c0_8, %c0_9] : memref<2x4xf32, #tpu.memory_space<vmem>>, vector<2x4xf32>
      %c0_10 = arith.constant 0 : index
      %c0_11 = arith.constant 0 : index
      %12 = vector.load %arg3[%c0_10, %c0_11] : memref<4x128xf32, #tpu.memory_space<vmem>>, vector<4x128xf32>
      %cst_12 = arith.constant dense<0.000000e+00> : vector<2x128xf32>
      %13 = tpu.matmul %11, %12, %cst_12 {dimension_numbers = #tpu.dot_dimension_numbers<[1], [0], [0], [1], [0, 0, 1, 1], [], []>} : vector<2x4xf32>, vector<4x128xf32>, vector<2x128xf32> -> vector<2x128xf32>
      %c0_13 = arith.constant 0 : index
      %c0_14 = arith.constant 0 : index
      %14 = vector.load %arg4[%c0_13, %c0_14] : memref<1x128xf32, #tpu.memory_space<vmem>>, vector<1x128xf32>
      %15 = vector.broadcast %14 : vector<1x128xf32> to vector<2x128xf32>
      %16 = arith.addf %13, %15 : vector<2x128xf32>
      %c0_15 = arith.constant 0 : index
      %c0_16 = arith.constant 0 : index
      %17 = vector.load %arg5[%c0_15, %c0_16] : memref<2x128xf32, #tpu.memory_space<vmem>>, vector<2x128xf32>
      tpu.vector_store %arg5[%c0_15, %c0_16], %16 {strides = array<i32>} : memref<2x128xf32, #tpu.memory_space<vmem>>, vector<2x128xf32>,
    } else {
    }
    return
  }
  func.func @transform_0(%arg0: i32, %arg1: i32) -> (i32, i32, i32) {
    %c0_i32 = arith.constant 0 : i32
    %c0_i32_0 = arith.constant 0 : i32
    return %arg0, %arg1, %c0_i32 : i32, i32, i32
  }
  func.func @transform_1(%arg0: i32, %arg1: i32) -> (i32, i32) {
    %c0_i32 = arith.constant 0 : i32
    %c0_i32_0 = arith.constant 0 : i32
    %c0_i32_1 = arith.constant 0 : i32
    return %c0_i32, %c0_i32_0 : i32, i32
  }
  func.func @transform_2(%arg0: i32, %arg1: i32) -> (i32, i32) {
    %c0_i32 = arith.constant 0 : i32
    %c0_i32_0 = arith.constant 0 : i32
    %c0_i32_1 = arith.constant 0 : i32
    return %c0_i32, %c0_i32_0 : i32, i32
  }
  func.func @transform_3(%arg0: i32, %arg1: i32) -> (i32, i32) {
    %c0_i32 = arith.constant 0 : i32
    %c0_i32_0 = arith.constant 0 : i32
    return %arg0, %c0_i32 : i32, i32
  }
}

</mosaic_0001>

<bundles_post_ra>
// kernel: tpu_custom_call.1
= control target key start
LH: loop header
LB: loop body
LE: loop exit
PB: predicated region body
PF: predicated region fallthrough
CT: control target
= control target key end

     0   :  { %8 = vsyncpa [#allocation5], 0  ;;  %s790_s12 = smov 0   ;;  %s792_s13 = smov 0   ;;  %s1023_s0 = inlined_call_operand.vmem [shape: f32[2,256,4], index: 0, kind: input, shape index: {}]   ;;  %s1024_s1 = inlined_call_operand.vmem [shape: f32[4,128], index: 1, kind: input, shape index: {}]   ;;  %s1025_s2 = inlined_call_operand.vmem [shape: f32[1,128], index: 2, kind: input, shape index: {}]   ;;  %s1026_s3 = inlined_call_operand.hbm [shape: f32[2,128], index: 3, kind: output, shape index: {}]  }
   0x1   :  { %s794_s14 = smov 0   ;;  %s796_s15 = smov 0  }
   0x2   :  { %s798_s16 = smov 0  }
   0x3 LB: > { %s621_s17 = sadd.s32 4294967295, %s764_s16   ;;  %s23_s18 = sadd.s32 1, %s760_s15  ;;  %s764_s16 = sphi %s798_s16, %s14_s16   ;;  %s760_s15 = sphi %s796_s15, %s1031_s15   ;;  %s756_s14 = sphi %s794_s14, %s1030_s14   ;;  %s752_s13 = sphi %s792_s13, %s1029_s13   ;;  %s748_s12 = sphi %s790_s12, %s1028_s12  }
   0x4   : > { %p24_p0 = scmp.ge.s32.totalorder %s23_s18, 2  ;;  %p42_p1 = scmp.ne.s32.totalorder %s752_s13, %s748_s12 }
   0x5   : > { %p43_p2 = scmp.eq.s32.totalorder %s764_s16, 0  ;;  %s35_s20 = sadd.s32 1, %s752_s13 }
   0x6   : > { %s1033_s18 = smov (%p24_p0, %s23_s18), 0  ;;  %p623_p5 = scmp.ge.s32.totalorder %s764_s16, 2 }
   0x7   : > { %p44_p3 = por %p43_p2, %p42_p1  ;;  %s31_s19 = ssub.s32 %s760_s15, %s1033_s18 }
   0x8   : > { %p33_p4 = scmp.eq.s32.totalorder %s31_s19, 0  ;;  %142 = sbr.rel (%p623_p5) target bundleno = 35 (0x23), region = 24 }
   0xa   : > { %s826_s21 = scalar_select %p33_p4, %s752_s13, %s35_s20  }
   0xf   : > { %145 = sbr.rel (!%p44_p3) target bundleno = 35 (0x23), region = 28  ;;  %s147_s22 = sand.u32 (%p44_p3), 1, %s752_s13  }
  0x10   : > { %s638_s23 = sshll.u32 (%p44_p3), %s760_s15, 7  ;;  %s624_s24 = sshll.u32 (%p44_p3), %s147_s22, 8 }
  0x11   : > { %s834_s27 = scalar_lea.vmem (%p44_p3), %s1023_s0, %s638_s23  ;;  %s839_s28 = scalar_lea.vmem (%p44_p3), [#allocation3], %s624_s24 }
  0x12   : > { %v245_v0 = vld [vmem:[%s834_s27] sm:$0xff] (%p44_p3)  ;;  %v247_v1 = vld [vmem:[%s834_s27 + $0x8] sm:$0xff] (%p44_p3)  ;;  %v249_v2 = vld [vmem:[%s834_s27 + $0x10] sm:$0xff] (%p44_p3) }
  0x13   : > { %246 = vst [vmem:[%s839_s28] sm:$0xff] (%p44_p3), %v245_v0  ;;  %248 = vst [vmem:[%s839_s28 + $0x8] sm:$0xff] (%p44_p3), %v247_v1  ;;  %v251_v3 = vld [vmem:[%s834_s27 + $0x18] sm:$0xff] (%p44_p3)  ;;  %v253_v4 = vld [vmem:[%s834_s27 + $0x20] sm:$0xff] (%p44_p3) }
  0x14   : > { %250 = vst [vmem:[%s839_s28 + $0x10] sm:$0xff] (%p44_p3), %v249_v2  ;;  %v255_v5 = vld [vmem:[%s834_s27 + $0x28] sm:$0xff] (%p44_p3)  ;;  %252 = vst [vmem:[%s839_s28 + $0x18] sm:$0xff] (%p44_p3), %v251_v3  ;;  %v257_v6 = vld [vmem:[%s834_s27 + $0x30] sm:$0xff] (%p44_p3) }
  0x15   : > { %254 = vst [vmem:[%s839_s28 + $0x20] sm:$0xff] (%p44_p3), %v253_v4  ;;  %256 = vst [vmem:[%s839_s28 + $0x28] sm:$0xff] (%p44_p3), %v255_v5  ;;  %v259_v7 = vld [vmem:[%s834_s27 + $0x38] sm:$0xff] (%p44_p3)  ;;  %v261_v8 = vld [vmem:[%s834_s27 + $0x40] sm:$0xff] (%p44_p3) }
  0x16   : > { %258 = vst [vmem:[%s839_s28 + $0x30] sm:$0xff] %v257_v6  ;;  %260 = vst [vmem:[%s839_s28 + $0x38] sm:$0xff] %v259_v7  ;;  %v263_v9 = vld [vmem:[%s834_s27 + $0x48] sm:$0xff]  ;;  %v265_v10 = vld [vmem:[%s834_s27 + $0x50] sm:$0xff] }
  0x17   : > { %262 = vst [vmem:[%s839_s28 + $0x40] sm:$0xff] %v261_v8  ;;  %v267_v11 = vld [vmem:[%s834_s27 + $0x58] sm:$0xff]  ;;  %264 = vst [vmem:[%s839_s28 + $0x48] sm:$0xff] %v263_v9  ;;  %v269_v12 = vld [vmem:[%s834_s27 + $0x60] sm:$0xff] }
  0x18   : > { %266 = vst [vmem:[%s839_s28 + $0x50] sm:$0xff] %v265_v10  ;;  %268 = vst [vmem:[%s839_s28 + $0x58] sm:$0xff] %v267_v11  ;;  %v271_v13 = vld [vmem:[%s834_s27 + $0x68] sm:$0xff]  ;;  %v273_v14 = vld [vmem:[%s834_s27 + $0x70] sm:$0xff] }
  0x19   : > { %270 = vst [vmem:[%s839_s28 + $0x60] sm:$0xff] %v269_v12  ;;  %272 = vst [vmem:[%s839_s28 + $0x68] sm:$0xff] %v271_v13  ;;  %v275_v15 = vld [vmem:[%s834_s27 + $0x78] sm:$0xff]  ;;  %v277_v16 = vld [vmem:[%s834_s27 + $0x100] sm:$0xff] }
  0x1a   : > { %274 = vst [vmem:[%s839_s28 + $0x70] sm:$0xff] %v273_v14  ;;  %v279_v17 = vld [vmem:[%s834_s27 + $0x108] sm:$0xff]  ;;  %276 = vst [vmem:[%s839_s28 + $0x78] sm:$0xff] %v275_v15  ;;  %v281_v18 = vld [vmem:[%s834_s27 + $0x110] sm:$0xff] }
  0x1b   : > { %278 = vst [vmem:[%s839_s28 + $0x80] sm:$0xff] %v277_v16  ;;  %280 = vst [vmem:[%s839_s28 + $0x88] sm:$0xff] %v279_v17  ;;  %v283_v19 = vld [vmem:[%s834_s27 + $0x118] sm:$0xff]  ;;  %v285_v20 = vld [vmem:[%s834_s27 + $0x120] sm:$0xff] }
  0x1c   : > { %282 = vst [vmem:[%s839_s28 + $0x90] sm:$0xff] %v281_v18  ;;  %284 = vst [vmem:[%s839_s28 + $0x98] sm:$0xff] %v283_v19  ;;  %v287_v21 = vld [vmem:[%s834_s27 + $0x128] sm:$0xff]  ;;  %v289_v22 = vld [vmem:[%s834_s27 + $0x130] sm:$0xff] }
  0x1d   : > { %286 = vst [vmem:[%s839_s28 + $0xa0] sm:$0xff] %v285_v20  ;;  %v291_v23 = vld [vmem:[%s834_s27 + $0x138] sm:$0xff]  ;;  %288 = vst [vmem:[%s839_s28 + $0xa8] sm:$0xff] %v287_v21  ;;  %v293_v24 = vld [vmem:[%s834_s27 + $0x140] sm:$0xff] }
  0x1e   : > { %290 = vst [vmem:[%s839_s28 + $0xb0] sm:$0xff] %v289_v22  ;;  %292 = vst [vmem:[%s839_s28 + $0xb8] sm:$0xff] %v291_v23  ;;  %v295_v25 = vld [vmem:[%s834_s27 + $0x148] sm:$0xff]  ;;  %v297_v26 = vld [vmem:[%s834_s27 + $0x150] sm:$0xff] }
  0x1f   : > { %294 = vst [vmem:[%s839_s28 + $0xc0] sm:$0xff] %v293_v24  ;;  %296 = vst [vmem:[%s839_s28 + $0xc8] sm:$0xff] %v295_v25  ;;  %v299_v27 = vld [vmem:[%s834_s27 + $0x158] sm:$0xff]  ;;  %v301_v28 = vld [vmem:[%s834_s27 + $0x160] sm:$0xff] }
  0x20   : > { %298 = vst [vmem:[%s839_s28 + $0xd0] sm:$0xff] %v297_v26  ;;  %v303_v29 = vld [vmem:[%s834_s27 + $0x168] sm:$0xff]  ;;  %300 = vst [vmem:[%s839_s28 + $0xd8] sm:$0xff] %v299_v27  ;;  %v305_v30 = vld [vmem:[%s834_s27 + $0x170] sm:$0xff] }
  0x21   : > { %302 = vst [vmem:[%s839_s28 + $0xe0] sm:$0xff] %v301_v28  ;;  %304 = vst [vmem:[%s839_s28 + $0xe8] sm:$0xff] %v303_v29  ;;  %v307_v31 = vld [vmem:[%s834_s27 + $0x178] sm:$0xff] }
  0x22   : > { %306 = vst [vmem:[%s839_s28 + $0xf0] sm:$0xff] %v305_v30  ;;  %308 = vst [vmem:[%s839_s28 + $0xf8] sm:$0xff] %v307_v31 }
  0x23 PF: > { %p627_p6 = scmp.ge.s32.totalorder %s764_s16, 1  ;;  %p313_p7 = scmp.lt.s32.totalorder %s764_s16, 3 }
  0x25   : > { %p314_p8 = pnand %p627_p6, %p313_p7 }
  0x26   : > { %s320_s29 = sand.u32 (!%p314_p8), 1, %s748_s12   ;;  %p629_p9 = scmp.ne.s32.totalorder (!%p314_p8), %s756_s14, 0 }
  0x27   : > { %317 = sbr.rel (%p314_p8) target bundleno = 350 (0x15e), region = 66  ;;  %s628_s30 = sshll.u32 (!%p314_p8), %s320_s29, 8 }
  0x28   : > { %s905_s4 = scalar_lea.vmem (!%p314_p8), [#allocation3], %s628_s30 }
  0x2e   : > { %343 = sbr.rel (%p629_p9) target bundleno = 53 (0x35), region = 74  ;;  %vm344_vm0 = vcmask (!%p629_p9), 25600   ;;  %v766_v32 = vmov (!%p629_p9), 0.0  }
  0x2f   : > { %345 = vst.msk [vmem:[#allocation2] sm:$0x3] (!%p629_p9), %vm344_vm0, %v766_v32 }
  0x35 PF: > { %v346_v33 = vld [vmem:[%s905_s4] sm:$0xff]  ;;  %v347_v34 = vld [vmem:[%s905_s4 + $0x8] sm:$0xff]  ;;  %v348_v35 = vld [vmem:[%s905_s4 + $0x10] sm:$0xff]  ;;  %vm379_vm1 = vcmask 31744   ;;  %vm456_vm2 = vcmask 1041409   ;;  %vm460_vm3 = vcmask 25600  }
  0x36   : > { %v349_v36 = vld [vmem:[%s905_s4 + $0x18] sm:$0xff]  ;;  %v380_v37 = vsel %vm379_vm1, %v346_v33, 0.0  ;;  %v381_v38 = vsel %vm379_vm1, %v347_v34, 0.0  ;;  %v383_v39 = vsel %vm379_vm1, %v348_v35, 0.0  ;;  %v350_v40 = vld [vmem:[%s905_s4 + $0x20] sm:$0xff]  ;;  %v351_v43 = vld [vmem:[%s905_s4 + $0x28] sm:$0xff] }
  0x37   : > { %v382_v41 = vadd.f32 %v381_v38, %v380_v37  ;;  %v385_v42 = vsel %vm379_vm1, %v349_v36, 0.0  ;;  %v362_v45 = vld [vmem:[%s905_s4 + $0x80] sm:$0xff]  ;;  %v363_v46 = vld [vmem:[%s905_s4 + $0x88] sm:$0xff]  ;;  %v387_v47 = vsel %vm379_vm1, %v350_v40, 0.0  ;;  %v352_v48 = vld [vmem:[%s905_s4 + $0x30] sm:$0xff]  ;;  %v389_v55 = vsel %vm379_vm1, %v351_v43, 0.0 }
  0x38   : > { %v364_v49 = vld [vmem:[%s905_s4 + $0x90] sm:$0xff]  ;;  %v365_v50 = vld [vmem:[%s905_s4 + $0x98] sm:$0xff]  ;;  %v417_v52 = vsel %vm379_vm1, %v362_v45, 0.0  ;;  %v418_v53 = vsel %vm379_vm1, %v363_v46, 0.0  ;;  %v366_v54 = vld [vmem:[%s905_s4 + $0xa0] sm:$0xff]  ;;  %v391_v62 = vsel %vm379_vm1, %v352_v48, 0.0 }
  0x39   : > { %v384_v44 = vadd.f32 %v383_v39, %v382_v41  ;;  %v419_v56 = vadd.f32 %v418_v53, %v417_v52  ;;  %v420_v57 = vsel %vm379_vm1, %v364_v49, 0.0  ;;  %v353_v58 = vld [vmem:[%s905_s4 + $0x38] sm:$0xff]  ;;  %v422_v60 = vsel %vm379_vm1, %v365_v50, 0.0  ;;  %v367_v61 = vld [vmem:[%s905_s4 + $0xa8] sm:$0xff]  ;;  %v354_v0 = vld [vmem:[%s905_s4 + $0x40] sm:$0xff]  ;;  %p630_p10 = scmp.ne.s32.totalorder %s756_s14, 1 }
  0x3a   : > { %v424_v2 = vsel %vm379_vm1, %v366_v54, 0.0  ;;  %v368_v3 = vld [vmem:[%s905_s4 + $0xb0] sm:$0xff]  ;;  %v393_v4 = vsel %vm379_vm1, %v353_v58, 0.0  ;;  %v355_v6 = vld [vmem:[%s905_s4 + $0x48] sm:$0xff]  ;;  %v426_v8 = vsel %vm379_vm1, %v367_v61, 0.0  ;;  %v369_v9 = vld [vmem:[%s905_s4 + $0xb8] sm:$0xff] }
  0x3b   : > { %v386_v51 = vadd.f32 %v385_v42, %v384_v44  ;;  %v421_v63 = vadd.f32 %v420_v57, %v419_v56  ;;  %v395_v10 = vsel %vm379_vm1, %v354_v0, 0.0  ;;  %v356_v12 = vld [vmem:[%s905_s4 + $0x50] sm:$0xff]  ;;  %v428_v14 = vsel %vm379_vm1, %v368_v3, 0.0  ;;  %v370_v15 = vld [vmem:[%s905_s4 + $0xc0] sm:$0xff]  ;;  %v357_v18 = vld [vmem:[%s905_s4 + $0x58] sm:$0xff] }
  0x3c   : > { %v397_v16 = vsel %vm379_vm1, %v355_v6, 0.0  ;;  %v430_v20 = vsel %vm379_vm1, %v369_v9, 0.0  ;;  %v371_v21 = vld [vmem:[%s905_s4 + $0xc8] sm:$0xff]  ;;  %v399_v22 = vsel %vm379_vm1, %v356_v12, 0.0  ;;  %v358_v24 = vld [vmem:[%s905_s4 + $0x60] sm:$0xff]  ;;  %v432_v26 = vsel %vm379_vm1, %v370_v15, 0.0 }
  0x3d   : > { %v388_v59 = vadd.f32 %v387_v47, %v386_v51  ;;  %v423_v5 = vadd.f32 %v422_v60, %v421_v63  ;;  %v372_v27 = vld [vmem:[%s905_s4 + $0xd0] sm:$0xff]  ;;  %v401_v28 = vsel %vm379_vm1, %v357_v18, 0.0  ;;  %v359_v30 = vld [vmem:[%s905_s4 + $0x68] sm:$0xff]  ;;  %v434_v32 = vsel %vm379_vm1, %v371_v21, 0.0  ;;  %v373_v33 = vld [vmem:[%s905_s4 + $0xd8] sm:$0xff] }
  0x3e   : > { %v403_v34 = vsel %vm379_vm1, %v358_v24, 0.0  ;;  %v360_v36 = vld [vmem:[%s905_s4 + $0x70] sm:$0xff]  ;;  %v436_v38 = vsel %vm379_vm1, %v372_v27, 0.0  ;;  %v374_v39 = vld [vmem:[%s905_s4 + $0xe0] sm:$0xff]  ;;  %v405_v40 = vsel %vm379_vm1, %v359_v30, 0.0  ;;  %v361_v42 = vld [vmem:[%s905_s4 + $0x78] sm:$0xff] }
  0x3f   : > { %v390_v1 = vadd.f32 %v389_v55, %v388_v59  ;;  %v425_v11 = vadd.f32 %v424_v2, %v423_v5  ;;  %v438_v44 = vsel %vm379_vm1, %v373_v33, 0.0  ;;  %v375_v45 = vld [vmem:[%s905_s4 + $0xe8] sm:$0xff]  ;;  %v407_v46 = vsel %vm379_vm1, %v360_v36, 0.0  ;;  %v376_v50 = vld [vmem:[%s905_s4 + $0xf0] sm:$0xff]  ;;  %v377_v55 = vld [vmem:[%s905_s4 + $0xf8] sm:$0xff] }
  0x40   : > { %v440_v49 = vsel %vm379_vm1, %v374_v39, 0.0  ;;  %v409_v51 = vsel %vm379_vm1, %v361_v42, 0.0  ;;  %v442_v54 = vsel %vm379_vm1, %v375_v45, 0.0  ;;  %v444_v58 = vsel %vm379_vm1, %v376_v50, 0.0 }
  0x41   : > { %v392_v7 = vadd.f32 %v391_v62, %v390_v1  ;;  %v427_v17 = vadd.f32 %v426_v8, %v425_v11  ;;  %v446_v61 = vsel %vm379_vm1, %v377_v55, 0.0  ;;  %vm478_vm4 = vcmask (!%p630_p10), 1043456  }
  0x42   : > { %v767_v15 = vmov (!%p630_p10), 0.0   ;;  %vm768_vm5 = vmmov (!%p630_p10), 0  }
  0x43   : > { %v394_v13 = vadd.f32 %v393_v4, %v392_v7  ;;  %v429_v23 = vadd.f32 %v428_v14, %v427_v17  ;;  %v467_v14 = vld [vmem:[%s1024_s1] sm:$0xf] (!%p630_p10)  ;;  %641 = vmatprep.subr.mxu0 (!%p630_p10), %v767_v15  ;;  %643 = vmatprep.mubr.msk.f32.mxu0 (!%p630_p10), %vm768_vm5, %v767_v15 }
  0x44   : > { %642 = vmatpush3.msk.msra.mxu0 (!%p630_p10), %vm478_vm4, %v467_v14  ;;  %v631_v17 = vld [vmem:[%s1025_s2] ss:$0 sm:$0xff] (!%p630_p10) }
  0x45   : > { %v396_v19 = vadd.f32 %v395_v10, %v394_v13  ;;  %v431_v29 = vadd.f32 %v430_v20, %v429_v23  ;;  %v378_v10 = vld [vmem:[#allocation2] sm:$0x3] }
  0x47   : > { %v398_v25 = vadd.f32 %v397_v16, %v396_v19  ;;  %v433_v35 = vadd.f32 %v432_v26, %v431_v29 }
  0x49   : > { %v400_v31 = vadd.f32 %v399_v22, %v398_v25  ;;  %v435_v41 = vadd.f32 %v434_v32, %v433_v35 }
  0x4b   : > { %v402_v37 = vadd.f32 %v401_v28, %v400_v31  ;;  %v437_v47 = vadd.f32 %v436_v38, %v435_v41 }
  0x4d   : > { %v404_v43 = vadd.f32 %v403_v34, %v402_v37  ;;  %v439_v52 = vadd.f32 %v438_v44, %v437_v47 }
  0x4f   : > { %v406_v48 = vadd.f32 %v405_v40, %v404_v43  ;;  %v441_v56 = vadd.f32 %v440_v49, %v439_v52 }
  0x51   : > { %v408_v53 = vadd.f32 %v407_v46, %v406_v48  ;;  %v443_v59 = vadd.f32 %v442_v54, %v441_v56 }
  0x53   : > { %v410_v57 = vadd.f32 %v409_v51, %v408_v53  ;;  %v445_v62 = vadd.f32 %v444_v58, %v443_v59 }
  0x55   : > { %v411_v60 = vrot.slane %v410_v57, 4  ;;  %v447_v0 = vadd.f32 %v446_v61, %v445_v62 }
  0x57   : > { %v412_v63 = vadd.f32 %v411_v60, %v410_v57  ;;  %v448_v2 = vrot.slane %v447_v0, 4 }
  0x59   : > { %v413_v1 = vrot.slane %v412_v63, 2  ;;  %v449_v4 = vadd.f32 %v448_v2, %v447_v0 }
  0x5b   : > { %v414_v3 = vadd.f32 %v413_v1, %v412_v63  ;;  %v450_v6 = vrot.slane %v449_v4, 2 }
  0x5d   : > { %v415_v5 = vrot.slane %v414_v3, 1  ;;  %v451_v7 = vadd.f32 %v450_v6, %v449_v4 }
  0x5f   : > { %v416_v8 = vadd.f32 %v415_v5, %v414_v3  ;;  %v452_v9 = vrot.slane %v451_v7, 1 }
  0x60   : > { %465 = sbr.rel (%p630_p10) target bundleno = 325 (0x145), region = 78 }
  0x61   : > { %v453_v11 = vadd.f32 %v452_v9, %v451_v7 }
  0x63   : > { %v457_v12 = vsel %vm456_vm2, %v453_v11, %v416_v8 }
  0x64   : > { %v459_v13 = vadd.f32 %v457_v12, %v378_v10 }
  0x66   : > { %461 = vst.msk [vmem:[#allocation2] sm:$0x3] %vm460_vm3, %v459_v13 }
  0x6d   : > { %v466_v16 = vld [vmem:[#allocation2] sm:$0x3] }
  0x6e   : > { %644 = vmatmul.mubr.msk.f32.vlgmr.msra.gmra.mrb[0].mxu0 %vm379_vm1, %v466_v16 }
 0x141   : > { %v548_v18 = vpop.f32.mrb[0].mxu0 }
 0x142   : > { %v549_v19 = vadd.f32 %v631_v17, %v548_v18  ;;  %v645_v20 = vpop.f32.mrb[1].mxu0 }
 0x144   : > { %552 = vst [vmem:[#allocation4] sm:$0x3] %v549_v19 }
 0x145 PF: > { %p982_p11 = scmp.eq.s32.totalorder %s621_s17, 1  ;;  %s769_s10 = smov [#allocation4]  }
 0x146   : > { %s562_s11 = sshll.u32 %s769_s10, 4  ;;  %s563_s11 = int_to_ptr.vmem [resolvable:$true] %s562_s11 }
 0x147   : > { %s696_s12 = scalar_lea.vmem %s563_s11, 32  ;;  %p703_p1 = scmp.lt.s32.totalorder %s563_s11, %s563_s11 }
 0x148   : > { %p697_p12 = scmp.ne.s32.totalorder %s563_s11, %s696_s12  ;;  %p704_p2 = scmp.lt.s32.totalorder %s696_s12, %s696_s12 }
 0x14a   : > { %p698_p13 = pnand %p697_p12, %p982_p11  ;;  %p705_p3 = por %p704_p2, %p703_p1 }
 0x14c   : > { %p699_p0 = pneg %p698_p13 }
 0x14e   : > { %p706_p4 = pnand %p705_p3, %p699_p0 }
 0x150   : > { %709 = shalt.err (!%p706_p4)
}
 0x151   : > { %s710_s17 = scalar_lea.hbm %s1026_s3, 32 }
 0x152   : > { %p711_p5 = scmp.ne.s32.totalorder %s1026_s3, %s710_s17  ;;  %p716_p8 = scmp.lt.u32.totalorder %s710_s17, %s1026_s3 }
 0x154   : > { %p712_p6 = pnand %p711_p5, %p982_p11 }
 0x156   : > { %p713_p7 = pneg %p712_p6 }
 0x158   : > { %p718_p9 = pnand %p716_p8, %p713_p7 }
 0x15a   : > { %721 = shalt.err (!%p718_p9)
}
 0x15b   : > { %647 = dma.vmem_to_hbm [thread:$0]  (%p982_p11), %s563_s11, 32, %s1026_s3, [#allocation5]  }
 0x15c   : > { %743 = dma.done.wait (%p982_p11), [#allocation5], 32  }
 0x15d   : > { %745 = vsyncadd (%p982_p11), [#allocation5], 4294967264 }
 0x15e PF: > { %s14_s16 = sadd.s32 1, %s764_s16   ;;  %s1028_s12 = smov %s752_s13 }
 0x15f   : > { %p11_p10 = scmp.ge.s32.totalorder %s14_s16, 4   ;;  %s1029_s13 = smov %s826_s21 }
 0x160   : > { %s1030_s14 = smov %s760_s15  ;;  %s1031_s15 = smov %s1033_s18 }
 0x161   :  { %13 = sbr.rel (!%p11_p10) target bundleno = 3 (0x3), region = 111 }
 0x168   :  { %575 = vsyncpa [#allocation5], 1 }
 0x169   :  { %577 = vsyncpa [#allocation5 + $0x1], 1 }

</bundles_post_ra>
